<compile_context>
chip_gen: v5e
topology: v5e:2x2
jax: 0.10.0
libtpu: 0.0.40
codegen_flags: <defaults>
</compile_context>

<pallas_src>
import functools
import math

import jax
import jax.numpy as jnp
from jax.experimental import pallas as pl
from jax.experimental.pallas import tpu as pltpu


# ----------------------------------------------------------------------------
# Kernel A (fused): normalize + 1x1-conv backbone + pixel embed + decoder layer
#                   + all prediction heads + per-query mask/depth maps
# ----------------------------------------------------------------------------
def _fused_forward_kernel(x_ref, mean_ref, istd_ref, wb_ref, bb_ref,
                          wp_ref, bp_ref, qp_ref, q_ref, wh_ref, bh_ref,
                          heads_ref, masks_ref, depths_ref,
                          *, c_in, d_model, memb_off, demb_off, scale):
    # --- per-channel normalize + 1x1-conv backbone (K=3 contraction -> VPU) --
    x = x_ref[0]                                             # (C, HW)
    xn = (x - mean_ref[...]) * istd_ref[...]                 # (C, HW)
    feat = wb_ref[:, 0:1] * xn[0:1, :]                       # (F, HW)
    for c in range(1, c_in):
        feat = feat + wb_ref[:, c:c + 1] * xn[c:c + 1, :]
    feat = jnp.maximum(feat + bb_ref[...], 0.0)              # ReLU, (F, HW)

    # --- pixel embedding: stays in vregs/VMEM, never written to HBM ----------
    P = jnp.dot(wp_ref[...], feat,
                preferred_element_type=jnp.float32) + bp_ref[...]            # (D, HW)

    # --- single cross-attention decoder layer (q @ w_q hoisted to __init__) --
    scores = jnp.dot(qp_ref[...], P,
                     preferred_element_type=jnp.float32) * scale             # (Q, HW)
    scores = scores - jnp.max(scores, axis=-1, keepdims=True)
    e = jnp.exp(scores)
    attn = e / jnp.sum(e, axis=-1, keepdims=True)                            # (Q, HW)
    # ctx[q, d] = sum_p attn[q, p] * P[d, p]  (contract the lane axis)
    ctx = jax.lax.dot_general(attn, P, (((1,), (1,)), ((), ())),
                              preferred_element_type=jnp.float32)            # (Q, D)
    qf = q_ref[...] + ctx                                                    # (Q, D)

    # --- all four heads as ONE lane-dense matmul + one unmasked store --------
    # lanes: [mask-embed (D) | depth-embed (D) | class logits (K1) | params (3) | 0-pad]
    heads = jnp.dot(qf, wh_ref[...],
                    preferred_element_type=jnp.float32) + bh_ref[...]        # (Q, HP)
    heads_ref[0] = heads

    # --- per-query mask / depth maps over all pixels --------------------------
    membed = heads[:, memb_off:memb_off + d_model]                           # (Q, D)
    dembed = heads[:, demb_off:demb_off + d_model]                           # (Q, D)
    masks_ref[0] = jnp.dot(membed, P, preferred_element_type=jnp.float32)    # (Q, HW)
    depths_ref[0] = jnp.dot(dembed, P, preferred_element_type=jnp.float32)   # (Q, HW)


# ----------------------------------------------------------------------------
# Kernel B: plane_inference hot path (per image)
#   valid_num + compaction permutation arrive via scalar prefetch; the row
#   permutation is applied in-kernel (no take_along_axis HBM round trip).
# ----------------------------------------------------------------------------
def _plane_inference_kernel(vnum_ref, perm_ref, mask_ref, depth_ref, heads_ref,
                            kinv_ref, seg_ref, pd_ref, sd_ref,
                            *, thr, num_queries, par_off):
    b = pl.program_id(0)
    Q = num_queries
    V = vnum_ref[b]                                          # scalar (SMEM)
    kinv = kinv_ref[...]                                     # (3, HW)
    HW = kinv.shape[1]

    # one-hot permutation matrix (valid queries first) from scalar-prefetched perm
    rows_qq = jax.lax.broadcasted_iota(jnp.int32, (Q, Q), 0)
    cols_qq = jax.lax.broadcasted_iota(jnp.int32, (Q, Q), 1)
    Pm = jnp.zeros((Q, Q), jnp.float32)
    for i in range(Q):                                       # Q is small & static
        Pm = Pm + jnp.where((rows_qq == i) & (cols_qq == perm_ref[b, i]), 1.0, 0.0)

    # apply the permutation on the (otherwise idle) MXU — keeps the VPU free
    m = jnp.dot(Pm, mask_ref[0], preferred_element_type=jnp.float32)      # (Q, HW) raw logits
    dpred = jnp.dot(Pm, depth_ref[0], preferred_element_type=jnp.float32)  # (Q, HW)
    hrows = jnp.dot(Pm, heads_ref[0], preferred_element_type=jnp.float32)  # (Q, HP)

    s = jax.nn.sigmoid(m)                                    # mask_pred.sigmoid()
    row1 = jax.lax.broadcasted_iota(jnp.int32, (Q, 1), 0)
    valid = row1 < V                                         # (Q, 1) valid-query rows

    # non_plane_mask = (valid_mask_pred > thr).sum(0) == 0
    above = jnp.where(valid, (s > thr).astype(jnp.float32), 0.0)
    non_plane = jnp.sum(above, axis=0, keepdims=True) == 0.0               # (1, HW)

    # plane_seg = sigmoid(cat(valid_mask_pred, tmp)) — "double sigmoid" as in
    # the reference; padded rows are sigmoid(0)=0.5, last row sigmoid(1)/sigmoid(0).
    main = jnp.where(valid, jax.nn.sigmoid(s), 0.5)                        # (Q, HW)
    last = jnp.where(non_plane, 0.7310585786300049, 0.5)                   # (1, HW)
    seg_ref[0] = jnp.concatenate([main, last], axis=0)       # single full-tile store

    # argmax over valid rows of plane_seg (sigmoid is monotone -> argmax of s),
    # first-occurrence tie-break via max + min-index-of-max (XLU reductions)
    masked = jnp.where(valid, s, -jnp.inf)
    best_val = jnp.max(masked, axis=0, keepdims=True)                      # (1, HW)
    rows = jax.lax.broadcasted_iota(jnp.int32, (Q, HW), 0)
    best_idx = jnp.min(jnp.where(masked >= best_val, rows, Q),
                       axis=0, keepdims=True)                              # (1, HW)

    # depth maps from plane params: 1 / clamp(param @ k_inv_dot_xy1, 0.1, 1e4)
    # (K=3 contraction -> VPU broadcast FMAs)
    dinv = hrows[:, par_off:par_off + 1] * kinv[0:1, :]
    for j in range(1, 3):
        dinv = dinv + hrows[:, par_off + j:par_off + j + 1] * kinv[j:j + 1, :]
    dmaps = 1.0 / jnp.clip(dinv, 0.1, 10000.0)                             # (Q, HW)

    # per-pixel gather by argmax as a one-hot sum (argmax is always < V)
    sel = (rows == best_idx).astype(jnp.float32)                           # (Q, HW)
    planes_depth = jnp.sum(sel * dmaps, axis=0, keepdims=True)
    seg_depth = jnp.sum(sel * dpred, axis=0, keepdims=True)
    pd_ref[0] = jnp.where(non_plane, 0.0, planes_depth)
    sd_ref[0] = jnp.where(non_plane, 0.0, seg_depth)


# ----------------------------------------------------------------------------
# Wrapper model
# ----------------------------------------------------------------------------
class PlaneRecTRPallas:
    def __init__(self, key, *, in_channels=3, H=16, W=16, feat_dim=32,
                 hidden_dim=32, num_queries=8, num_classes=2,
                 plane_mask_threshold=0.5):
        self.C, self.H, self.W = in_channels, H, W
        self.F, self.D = feat_dim, hidden_dim
        self.Q = num_queries
        self.K1 = num_classes + 1                            # classes + no-object
        self.plane_mask_threshold = float(plane_mask_threshold)
        self.predict_param = True
        self.predict_depth = True

        f32 = jnp.float32
        ks = jax.random.split(key, 12)

        def init(k, shape, scale=0.1):
            return (scale * jax.random.normal(k, shape)).astype(f32)

        self.pixel_mean = jnp.array([123.675, 116.28, 103.53], f32)[:in_channels].reshape(in_channels, 1)
        self.pixel_std = jnp.array([58.395, 57.12, 57.375], f32)[:in_channels].reshape(in_channels, 1)
        self.pixel_inv_std = 1.0 / self.pixel_std            # multiply instead of divide in-kernel

        self.w_backbone = init(ks[0], (self.F, self.C))
        self.b_backbone = init(ks[1], (self.F, 1), 0.01)
        self.w_pix = init(ks[2], (self.D, self.F))
        self.b_pix = init(ks[3], (self.D, 1), 0.01)
        self.query_embed = init(ks[4], (self.Q, self.D), 1.0)
        self.w_q = init(ks[5], (self.D, self.D))
        self.w_cls = init(ks[6], (self.D, self.K1), 0.5)
        self.b_cls = jnp.zeros((1, self.K1), f32)
        self.w_param = init(ks[7], (self.D, 3))
        self.b_param = init(ks[8], (1, 3), 0.1)
        self.w_mask = init(ks[9], (self.D, self.D))
        self.b_mask = jnp.zeros((1, self.D), f32)
        self.w_depth = init(ks[10], (self.D, self.D))
        self.b_depth = init(ks[11], (1, self.D), 0.1)

        # hoisted constant: q' = query_embed @ w_q (both are parameters)
        self.q_proj = (self.query_embed @ self.w_q).astype(f32)

        # pack the four heads into a single lane-dense (D, HP>=128) matrix
        D, K1 = self.D, self.K1
        self.MEMB_OFF = 0
        self.DEMB_OFF = D
        self.CLS_OFF = 2 * D
        self.PAR_OFF = 2 * D + K1
        total = self.PAR_OFF + 3
        self.HP = max(128, -(-total // 128) * 128)
        w_heads = jnp.zeros((D, self.HP), f32)
        w_heads = w_heads.at[:, self.MEMB_OFF:self.MEMB_OFF + D].set(self.w_mask)
        w_heads = w_heads.at[:, self.DEMB_OFF:self.DEMB_OFF + D].set(self.w_depth)
        w_heads = w_heads.at[:, self.CLS_OFF:self.CLS_OFF + K1].set(self.w_cls)
        w_heads = w_heads.at[:, self.PAR_OFF:self.PAR_OFF + 3].set(self.w_param)
        b_heads = jnp.zeros((1, self.HP), f32)
        b_heads = b_heads.at[:, self.MEMB_OFF:self.MEMB_OFF + D].set(self.b_mask)
        b_heads = b_heads.at[:, self.DEMB_OFF:self.DEMB_OFF + D].set(self.b_depth)
        b_heads = b_heads.at[:, self.CLS_OFF:self.CLS_OFF + K1].set(self.b_cls)
        b_heads = b_heads.at[:, self.PAR_OFF:self.PAR_OFF + 3].set(self.b_param)
        self.w_heads = w_heads
        self.b_heads = b_heads

        # k_inv_dot_xy1 : (3, H*W), deterministic synthetic camera intrinsics
        ys, xs = jnp.meshgrid(jnp.arange(H, dtype=f32), jnp.arange(W, dtype=f32), indexing="ij")
        xy1 = jnp.stack([xs.reshape(-1), ys.reshape(-1), jnp.ones(H * W, f32)], axis=0)
        fx = fy = float(W)
        cx, cy = W / 2.0, H / 2.0
        K_inv = jnp.array([[1.0 / fx, 0.0, -cx / fx],
                           [0.0, 1.0 / fy, -cy / fy],
                           [0.0, 0.0, 1.0]], f32)
        self.k_inv_dot_xy1 = K_inv @ xy1

    def __call__(self, images):
        # images: (B, C, H, W) float32, NCHW (same convention as the PyTorch model)
        B = images.shape[0]
        C, H, W, F, D, Q, K1, HP = (self.C, self.H, self.W, self.F, self.D,
                                    self.Q, self.K1, self.HP)
        HW = H * W
        x = images.reshape(B, C, HW)

        # --- fused kernel: backbone + pixel embed + decoder + heads + maps ----
        fused = functools.partial(_fused_forward_kernel, c_in=C, d_model=D,
                                  memb_off=self.MEMB_OFF, demb_off=self.DEMB_OFF,
                                  scale=1.0 / math.sqrt(D))
        heads, masks, depths = pl.pallas_call(
            fused,
            out_shape=(jax.ShapeDtypeStruct((B, Q, HP), jnp.float32),
                       jax.ShapeDtypeStruct((B, Q, HW), jnp.float32),
                       jax.ShapeDtypeStruct((B, Q, HW), jnp.float32)),
            grid=(B,),
            in_specs=[
                pl.BlockSpec((1, C, HW), lambda b: (b, 0, 0)),
                # weights: index_map is constant -> block is not re-fetched per step
                pl.BlockSpec((C, 1), lambda b: (0, 0)),
                pl.BlockSpec((C, 1), lambda b: (0, 0)),
                pl.BlockSpec((F, C), lambda b: (0, 0)),
                pl.BlockSpec((F, 1), lambda b: (0, 0)),
                pl.BlockSpec((D, F), lambda b: (0, 0)),
                pl.BlockSpec((D, 1), lambda b: (0, 0)),
                pl.BlockSpec((Q, D), lambda b: (0, 0)),
                pl.BlockSpec((Q, D), lambda b: (0, 0)),
                pl.BlockSpec((D, HP), lambda b: (0, 0)),
                pl.BlockSpec((1, HP), lambda b: (0, 0)),
            ],
            out_specs=[
                pl.BlockSpec((1, Q, HP), lambda b: (b, 0, 0)),
                pl.BlockSpec((1, Q, HW), lambda b: (b, 0, 0)),
                pl.BlockSpec((1, Q, HW), lambda b: (b, 0, 0)),
            ],
            compiler_params=pltpu.CompilerParams(dimension_semantics=("parallel",)),
        )(x, self.pixel_mean, self.pixel_inv_std, self.w_backbone, self.b_backbone,
          self.w_pix, self.b_pix, self.q_proj, self.query_embed,
          self.w_heads, self.b_heads)

        # --- tiny XLA glue: label selection + stable compaction permutation ----
        logits = heads[:, :, self.CLS_OFF:self.CLS_OFF + K1]          # (B, Q, K1)
        params = heads[:, :, self.PAR_OFF:self.PAR_OFF + 3]           # (B, Q, 3)
        probs = jax.nn.softmax(logits, axis=-1)                       # F.softmax(mask_cls, -1)
        pred_labels = jnp.argmax(probs, axis=-1)                      # (B, Q)
        label_mask = pred_labels == 1                                 # labels != 1 -> 0; mask = labels > 0
        any_valid = jnp.any(label_mask, axis=-1)
        # reference softmaxes first, then takes mask_cls[:, 1].max(dim=0):
        # i.e. argmax over class-1 *probabilities* across queries.
        fallback = jnp.argmax(probs[..., 1], axis=-1)
        fallback_mask = jnp.arange(Q)[None, :] == fallback[:, None]
        label_mask = jnp.where(any_valid[:, None], label_mask, fallback_mask)
        valid_num = jnp.sum(label_mask, axis=-1).astype(jnp.int32)    # (B,)
        perm = jnp.argsort(jnp.where(label_mask, 0, 1), axis=-1).astype(jnp.int32)  # stable: valid first
        params_p = jnp.take_along_axis(params, perm[:, :, None], axis=1)  # tiny (B,Q,3), result dict only

        # --- kernel B: plane_inference -----------------------------------------
        kernel4 = functools.partial(_plane_inference_kernel,
                                    thr=self.plane_mask_threshold,
                                    num_queries=Q, par_off=self.PAR_OFF)
        grid_spec = pltpu.PrefetchScalarGridSpec(
            num_scalar_prefetch=2,
            grid=(B,),
            in_specs=[
                pl.BlockSpec((1, Q, HW), lambda b, vn, pm: (b, 0, 0)),
                pl.BlockSpec((1, Q, HW), lambda b, vn, pm: (b, 0, 0)),
                pl.BlockSpec((1, Q, HP), lambda b, vn, pm: (b, 0, 0)),
                pl.BlockSpec((3, HW), lambda b, vn, pm: (0, 0)),
            ],
            out_specs=[
                pl.BlockSpec((1, Q + 1, HW), lambda b, vn, pm: (b, 0, 0)),
                pl.BlockSpec((1, 1, HW), lambda b, vn, pm: (b, 0, 0)),
                pl.BlockSpec((1, 1, HW), lambda b, vn, pm: (b, 0, 0)),
            ],
        )
        plane_seg, planes_depth, seg_depth = pl.pallas_call(
            kernel4,
            out_shape=(jax.ShapeDtypeStruct((B, Q + 1, HW), jnp.float32),
                       jax.ShapeDtypeStruct((B, 1, HW), jnp.float32),
                       jax.ShapeDtypeStruct((B, 1, HW), jnp.float32)),
            grid_spec=grid_spec,
            compiler_params=pltpu.CompilerParams(dimension_semantics=("parallel",)),
        )(valid_num, perm, masks, depths, heads, self.k_inv_dot_xy1)

        processed_results = []
        for b in range(B):
            processed_results.append({
                "sem_seg": plane_seg[b].reshape(Q + 1, H, W),
                "planes_depth": planes_depth[b, 0].reshape(H, W),
                "seg_depth": seg_depth[b, 0].reshape(H, W),
                # padded plane params: the first `valid_num` rows are the valid ones
                "valid_params": params_p[b],
                "valid_num": valid_num[b],
            })
        return processed_results


if __name__ == "__main__":
    key = jax.random.PRNGKey(0)
    k_img, k_model = jax.random.split(key)
    B, C, H, W = 2, 3, 16, 16
    images = jax.random.uniform(k_img, (B, C, H, W), jnp.float32) * 255.0

    model = PlaneRecTRPallas(k_model, in_channels=C, H=H, W=W,
                             feat_dim=32, hidden_dim=32, num_queries=8,
                             num_classes=2, plane_mask_threshold=0.5)
    results = model(images)
    jax.block_until_ready(results)
    print("KERNEL_OK")
</pallas_src>

<mosaic_0001>
module attributes {stable_mosaic.version = 11 : i64} {
  func.func @_fused_forward_kernel(%arg0: i32, %arg1: memref<1x3x256xf32, #tpu.memory_space<vmem>>, %arg2: memref<3x1xf32, #tpu.memory_space<vmem>>, %arg3: memref<3x1xf32, #tpu.memory_space<vmem>>, %arg4: memref<32x3xf32, #tpu.memory_space<vmem>>, %arg5: memref<32x1xf32, #tpu.memory_space<vmem>>, %arg6: memref<32x32xf32, #tpu.memory_space<vmem>>, %arg7: memref<32x1xf32, #tpu.memory_space<vmem>>, %arg8: memref<8x32xf32, #tpu.memory_space<vmem>>, %arg9: memref<8x32xf32, #tpu.memory_space<vmem>>, %arg10: memref<32x128xf32, #tpu.memory_space<vmem>>, %arg11: memref<1x128xf32, #tpu.memory_space<vmem>>, %arg12: memref<1x8x128xf32, #tpu.memory_space<vmem>>, %arg13: memref<1x8x256xf32, #tpu.memory_space<vmem>>, %arg14: memref<1x8x256xf32, #tpu.memory_space<vmem>>) attributes {dimension_semantics = [#tpu.dimension_semantics<parallel>], iteration_bounds = array<i64: 2>, scalar_prefetch = 0 : i64, scratch_operands = 0 : i64, tpu.core_type = #tpu.core_type<tc>, window_params = [{transform_indices = @transform_0, window_bounds = array<i64: 1, 3, 256>}, {pipeline_mode = #tpu.pipeline_mode<synchronous>, transform_indices = @transform_1, window_bounds = array<i64: 3, 1>}, {pipeline_mode = #tpu.pipeline_mode<synchronous>, transform_indices = @transform_2, window_bounds = array<i64: 3, 1>}, {pipeline_mode = #tpu.pipeline_mode<synchronous>, transform_indices = @transform_3, window_bounds = array<i64: 32, 3>}, {pipeline_mode = #tpu.pipeline_mode<synchronous>, transform_indices = @transform_4, window_bounds = array<i64: 32, 1>}, {pipeline_mode = #tpu.pipeline_mode<synchronous>, transform_indices = @transform_5, window_bounds = array<i64: 32, 32>}, {pipeline_mode = #tpu.pipeline_mode<synchronous>, transform_indices = @transform_6, window_bounds = array<i64: 32, 1>}, {pipeline_mode = #tpu.pipeline_mode<synchronous>, transform_indices = @transform_7, window_bounds = array<i64: 8, 32>}, {pipeline_mode = #tpu.pipeline_mode<synchronous>, transform_indices = @transform_8, window_bounds = array<i64: 8, 32>}, {pipeline_mode = #tpu.pipeline_mode<synchronous>, transform_indices = @transform_9, window_bounds = array<i64: 32, 128>}, {pipeline_mode = #tpu.pipeline_mode<synchronous>, transform_indices = @transform_10, window_bounds = array<i64: 1, 128>}, {transform_indices = @transform_11, window_bounds = array<i64: 1, 8, 128>}, {transform_indices = @transform_12, window_bounds = array<i64: 1, 8, 256>}, {transform_indices = @transform_13, window_bounds = array<i64: 1, 8, 256>}]} {
    %c0 = arith.constant 0 : index
    %c0_0 = arith.constant 0 : index
    %c0_1 = arith.constant 0 : index
    %0 = vector.load %arg1[%c0, %c0_0, %c0_1] : memref<1x3x256xf32, #tpu.memory_space<vmem>>, vector<1x3x256xf32>
    %1 = vector.shape_cast %0 : vector<1x3x256xf32> to vector<3x256xf32>
    %c0_2 = arith.constant 0 : index
    %c0_3 = arith.constant 0 : index
    %2 = vector.load %arg2[%c0_2, %c0_3] : memref<3x1xf32, #tpu.memory_space<vmem>>, vector<3x1xf32>
    %3 = vector.broadcast %2 : vector<3x1xf32> to vector<3x256xf32>
    %4 = arith.subf %1, %3 : vector<3x256xf32>
    %c0_4 = arith.constant 0 : index
    %c0_5 = arith.constant 0 : index
    %5 = vector.load %arg3[%c0_4, %c0_5] : memref<3x1xf32, #tpu.memory_space<vmem>>, vector<3x1xf32>
    %6 = vector.broadcast %5 : vector<3x1xf32> to vector<3x256xf32>
    %7 = arith.mulf %4, %6 : vector<3x256xf32>
    %c0_6 = arith.constant 0 : index
    %c0_7 = arith.constant 0 : index
    %8 = vector.load %arg4[%c0_6, %c0_7] : memref<32x3xf32, #tpu.memory_space<vmem>>, vector<32x1xf32>
    %9 = vector.extract_strided_slice %7 {offsets = [0, 0], sizes = [1, 256], strides = [1, 1]} : vector<3x256xf32> to vector<1x256xf32>
    %10 = vector.broadcast %8 : vector<32x1xf32> to vector<32x256xf32>
    %11 = vector.broadcast %9 : vector<1x256xf32> to vector<32x256xf32>
    %12 = arith.mulf %10, %11 : vector<32x256xf32>
    %c0_8 = arith.constant 0 : index
    %c1 = arith.constant 1 : index
    %13 = vector.load %arg4[%c0_8, %c1] : memref<32x3xf32, #tpu.memory_space<vmem>>, vector<32x1xf32>
    %14 = vector.extract_strided_slice %7 {offsets = [1, 0], sizes = [1, 256], strides = [1, 1]} : vector<3x256xf32> to vector<1x256xf32>
    %15 = vector.broadcast %13 : vector<32x1xf32> to vector<32x256xf32>
    %16 = vector.broadcast %14 : vector<1x256xf32> to vector<32x256xf32>
    %17 = arith.mulf %15, %16 : vector<32x256xf32>
    %18 = arith.addf %12, %17 : vector<32x256xf32>
    %c0_9 = arith.constant 0 : index
    %c2 = arith.constant 2 : index
    %19 = vector.load %arg4[%c0_9, %c2] : memref<32x3xf32, #tpu.memory_space<vmem>>, vector<32x1xf32>
    %20 = vector.extract_strided_slice %7 {offsets = [2, 0], sizes = [1, 256], strides = [1, 1]} : vector<3x256xf32> to vector<1x256xf32>
    %21 = vector.broadcast %19 : vector<32x1xf32> to vector<32x256xf32>
    %22 = vector.broadcast %20 : vector<1x256xf32> to vector<32x256xf32>
    %23 = arith.mulf %21, %22 : vector<32x256xf32>
    %24 = arith.addf %18, %23 : vector<32x256xf32>
    %c0_10 = arith.constant 0 : index
    %c0_11 = arith.constant 0 : index
    %25 = vector.load %arg5[%c0_10, %c0_11] : memref<32x1xf32, #tpu.memory_space<vmem>>, vector<32x1xf32>
    %26 = vector.broadcast %25 : vector<32x1xf32> to vector<32x256xf32>
    %27 = arith.addf %24, %26 : vector<32x256xf32>
    %cst = arith.constant 0.000000e+00 : f32
    %28 = vector.broadcast %cst : f32 to vector<32x256xf32>
    %29 = arith.maximumf %27, %28 : vector<32x256xf32>
    %c0_12 = arith.constant 0 : index
    %c0_13 = arith.constant 0 : index
    %30 = vector.load %arg6[%c0_12, %c0_13] : memref<32x32xf32, #tpu.memory_space<vmem>>, vector<32x32xf32>
    %cst_14 = arith.constant dense<0.000000e+00> : vector<32x256xf32>
    %31 = tpu.matmul %30, %29, %cst_14 {dimension_numbers = #tpu.dot_dimension_numbers<[1], [0], [0], [1], [0, 0, 1, 1], [], []>} : vector<32x32xf32>, vector<32x256xf32>, vector<32x256xf32> -> vector<32x256xf32>
    %c0_15 = arith.constant 0 : index
    %c0_16 = arith.constant 0 : index
    %32 = vector.load %arg7[%c0_15, %c0_16] : memref<32x1xf32, #tpu.memory_space<vmem>>, vector<32x1xf32>
    %33 = vector.broadcast %32 : vector<32x1xf32> to vector<32x256xf32>
    %34 = arith.addf %31, %33 : vector<32x256xf32>
    %c0_17 = arith.constant 0 : index
    %c0_18 = arith.constant 0 : index
    %35 = vector.load %arg8[%c0_17, %c0_18] : memref<8x32xf32, #tpu.memory_space<vmem>>, vector<8x32xf32>
    %cst_19 = arith.constant dense<0.000000e+00> : vector<8x256xf32>
    %36 = tpu.matmul %35, %34, %cst_19 {dimension_numbers = #tpu.dot_dimension_numbers<[1], [0], [0], [1], [0, 0, 1, 1], [], []>} : vector<8x32xf32>, vector<32x256xf32>, vector<8x256xf32> -> vector<8x256xf32>
    %cst_20 = arith.constant 0.176776692 : f32
    %37 = vector.broadcast %cst_20 : f32 to vector<8x256xf32>
    %38 = arith.mulf %36, %37 : vector<8x256xf32>
    %cst_21 = arith.constant dense<0xFF800000> : vector<8xf32>
    %39 = vector.multi_reduction <maximumf>, %38, %cst_21 [1] : vector<8x256xf32> to vector<8xf32>
    %40 = vector.shape_cast %39 : vector<8xf32> to vector<8x1xf32>
    %41 = vector.broadcast %40 : vector<8x1xf32> to vector<8x256xf32>
    %42 = arith.subf %38, %41 : vector<8x256xf32>
    %43 = math.exp %42 : vector<8x256xf32>
    %cst_22 = arith.constant dense<0.000000e+00> : vector<8xf32>
    %44 = vector.multi_reduction <add>, %43, %cst_22 [1] : vector<8x256xf32> to vector<8xf32>
    %45 = vector.shape_cast %44 : vector<8xf32> to vector<8x1xf32>
    %46 = vector.broadcast %45 : vector<8x1xf32> to vector<8x256xf32>
    %47 = arith.divf %43, %46 : vector<8x256xf32>
    %cst_23 = arith.constant dense<0.000000e+00> : vector<8x32xf32>
    %48 = tpu.matmul %47, %34, %cst_23 {dimension_numbers = #tpu.dot_dimension_numbers<[1], [1], [0], [0], [0, 0, 1, 0], [], []>} : vector<8x256xf32>, vector<32x256xf32>, vector<8x32xf32> -> vector<8x32xf32>
    %c0_24 = arith.constant 0 : index
    %c0_25 = arith.constant 0 : index
    %49 = vector.load %arg9[%c0_24, %c0_25] : memref<8x32xf32, #tpu.memory_space<vmem>>, vector<8x32xf32>
    %50 = arith.addf %49, %48 : vector<8x32xf32>
    %c0_26 = arith.constant 0 : index
    %c0_27 = arith.constant 0 : index
    %51 = vector.load %arg10[%c0_26, %c0_27] : memref<32x128xf32, #tpu.memory_space<vmem>>, vector<32x128xf32>
    %cst_28 = arith.constant dense<0.000000e+00> : vector<8x128xf32>
    %52 = tpu.matmul %50, %51, %cst_28 {dimension_numbers = #tpu.dot_dimension_numbers<[1], [0], [0], [1], [0, 0, 1, 1], [], []>} : vector<8x32xf32>, vector<32x128xf32>, vector<8x128xf32> -> vector<8x128xf32>
    %c0_29 = arith.constant 0 : index
    %c0_30 = arith.constant 0 : index
    %53 = vector.load %arg11[%c0_29, %c0_30] : memref<1x128xf32, #tpu.memory_space<vmem>>, vector<1x128xf32>
    %54 = vector.broadcast %53 : vector<1x128xf32> to vector<8x128xf32>
    %55 = arith.addf %52, %54 : vector<8x128xf32>
    %c0_31 = arith.constant 0 : index
    %c0_32 = arith.constant 0 : index
    %c0_33 = arith.constant 0 : index
    %56 = vector.load %arg12[%c0_31, %c0_32, %c0_33] : memref<1x8x128xf32, #tpu.memory_space<vmem>>, vector<1x8x128xf32>
    %57 = vector.shape_cast %56 : vector<1x8x128xf32> to vector<8x128xf32>
    %58 = vector.shape_cast %55 : vector<8x128xf32> to vector<1x8x128xf32>
    tpu.vector_store %arg12[%c0_31, %c0_32, %c0_33], %58 {strides = array<i32>} : memref<1x8x128xf32, #tpu.memory_space<vmem>>, vector<1x8x128xf32>,
    %59 = vector.extract_strided_slice %55 {offsets = [0, 0], sizes = [8, 32], strides = [1, 1]} : vector<8x128xf32> to vector<8x32xf32>
    %60 = vector.extract_strided_slice %55 {offsets = [0, 32], sizes = [8, 32], strides = [1, 1]} : vector<8x128xf32> to vector<8x32xf32>
    %cst_34 = arith.constant dense<0.000000e+00> : vector<8x256xf32>
    %61 = tpu.matmul %59, %34, %cst_34 {dimension_numbers = #tpu.dot_dimension_numbers<[1], [0], [0], [1], [0, 0, 1, 1], [], []>} : vector<8x32xf32>, vector<32x256xf32>, vector<8x256xf32> -> vector<8x256xf32>
    %c0_35 = arith.constant 0 : index
    %c0_36 = arith.constant 0 : index
    %c0_37 = arith.constant 0 : index
    %62 = vector.load %arg13[%c0_35, %c0_36, %c0_37] : memref<1x8x256xf32, #tpu.memory_space<vmem>>, vector<1x8x256xf32>
    %63 = vector.shape_cast %62 : vector<1x8x256xf32> to vector<8x256xf32>
    %64 = vector.shape_cast %61 : vector<8x256xf32> to vector<1x8x256xf32>
    tpu.vector_store %arg13[%c0_35, %c0_36, %c0_37], %64 {strides = array<i32>} : memref<1x8x256xf32, #tpu.memory_space<vmem>>, vector<1x8x256xf32>,
    %cst_38 = arith.constant dense<0.000000e+00> : vector<8x256xf32>
    %65 = tpu.matmul %60, %34, %cst_38 {dimension_numbers = #tpu.dot_dimension_numbers<[1], [0], [0], [1], [0, 0, 1, 1], [], []>} : vector<8x32xf32>, vector<32x256xf32>, vector<8x256xf32> -> vector<8x256xf32>
    %c0_39 = arith.constant 0 : index
    %c0_40 = arith.constant 0 : index
    %c0_41 = arith.constant 0 : index
    %66 = vector.load %arg14[%c0_39, %c0_40, %c0_41] : memref<1x8x256xf32, #tpu.memory_space<vmem>>, vector<1x8x256xf32>
    %67 = vector.shape_cast %66 : vector<1x8x256xf32> to vector<8x256xf32>
    %68 = vector.shape_cast %65 : vector<8x256xf32> to vector<1x8x256xf32>
    tpu.vector_store %arg14[%c0_39, %c0_40, %c0_41], %68 {strides = array<i32>} : memref<1x8x256xf32, #tpu.memory_space<vmem>>, vector<1x8x256xf32>,
    return
  }
  func.func @transform_0(%arg0: i32) -> (i32, i32, i32) {
    %c0_i32 = arith.constant 0 : i32
    %c0_i32_0 = arith.constant 0 : i32
    %c0_i32_1 = arith.constant 0 : i32
    return %arg0, %c0_i32, %c0_i32_0 : i32, i32, i32
  }
  func.func @transform_1(%arg0: i32) -> (i32, i32) {
    %c0_i32 = arith.constant 0 : i32
    %c0_i32_0 = arith.constant 0 : i32
    %c0_i32_1 = arith.constant 0 : i32
    return %c0_i32, %c0_i32_0 : i32, i32
  }
  func.func @transform_2(%arg0: i32) -> (i32, i32) {
    %c0_i32 = arith.constant 0 : i32
    %c0_i32_0 = arith.constant 0 : i32
    %c0_i32_1 = arith.constant 0 : i32
    return %c0_i32, %c0_i32_0 : i32, i32
  }
  func.func @transform_3(%arg0: i32) -> (i32, i32) {
    %c0_i32 = arith.constant 0 : i32
    %c0_i32_0 = arith.constant 0 : i32
    %c0_i32_1 = arith.constant 0 : i32
    return %c0_i32, %c0_i32_0 : i32, i32
  }
  func.func @transform_4(%arg0: i32) -> (i32, i32) {
    %c0_i32 = arith.constant 0 : i32
    %c0_i32_0 = arith.constant 0 : i32
    %c0_i32_1 = arith.constant 0 : i32
    return %c0_i32, %c0_i32_0 : i32, i32
  }
  func.func @transform_5(%arg0: i32) -> (i32, i32) {
    %c0_i32 = arith.constant 0 : i32
    %c0_i32_0 = arith.constant 0 : i32
    %c0_i32_1 = arith.constant 0 : i32
    return %c0_i32, %c0_i32_0 : i32, i32
  }
  func.func @transform_6(%arg0: i32) -> (i32, i32) {
    %c0_i32 = arith.constant 0 : i32
    %c0_i32_0 = arith.constant 0 : i32
    %c0_i32_1 = arith.constant 0 : i32
    return %c0_i32, %c0_i32_0 : i32, i32
  }
  func.func @transform_7(%arg0: i32) -> (i32, i32) {
    %c0_i32 = arith.constant 0 : i32
    %c0_i32_0 = arith.constant 0 : i32
    %c0_i32_1 = arith.constant 0 : i32
    return %c0_i32, %c0_i32_0 : i32, i32
  }
  func.func @transform_8(%arg0: i32) -> (i32, i32) {
    %c0_i32 = arith.constant 0 : i32
    %c0_i32_0 = arith.constant 0 : i32
    %c0_i32_1 = arith.constant 0 : i32
    return %c0_i32, %c0_i32_0 : i32, i32
  }
  func.func @transform_9(%arg0: i32) -> (i32, i32) {
    %c0_i32 = arith.constant 0 : i32
    %c0_i32_0 = arith.constant 0 : i32
    %c0_i32_1 = arith.constant 0 : i32
    return %c0_i32, %c0_i32_0 : i32, i32
  }
  func.func @transform_10(%arg0: i32) -> (i32, i32) {
    %c0_i32 = arith.constant 0 : i32
    %c0_i32_0 = arith.constant 0 : i32
    %c0_i32_1 = arith.constant 0 : i32
    return %c0_i32, %c0_i32_0 : i32, i32
  }
  func.func @transform_11(%arg0: i32) -> (i32, i32, i32) {
    %c0_i32 = arith.constant 0 : i32
    %c0_i32_0 = arith.constant 0 : i32
    %c0_i32_1 = arith.constant 0 : i32
    return %arg0, %c0_i32, %c0_i32_0 : i32, i32, i32
  }
  func.func @transform_12(%arg0: i32) -> (i32, i32, i32) {
    %c0_i32 = arith.constant 0 : i32
    %c0_i32_0 = arith.constant 0 : i32
    %c0_i32_1 = arith.constant 0 : i32
    return %arg0, %c0_i32, %c0_i32_0 : i32, i32, i32
  }
  func.func @transform_13(%arg0: i32) -> (i32, i32, i32) {
    %c0_i32 = arith.constant 0 : i32
    %c0_i32_0 = arith.constant 0 : i32
    %c0_i32_1 = arith.constant 0 : i32
    return %arg0, %c0_i32, %c0_i32_0 : i32, i32, i32
  }
}

</mosaic_0001>

<bundles_post_ra>
// kernel: tpu_custom_call.1
= control target key start
LH: loop header
LB: loop body
LE: loop exit
PB: predicated region body
PF: predicated region fallthrough
CT: control target
= control target key end

     0   :  { %s1736_s0 = inlined_call_operand.vmem [shape: f32[2,3,256], index: 0, kind: input, shape index: {}]   ;;  %s1737_s1 = inlined_call_operand.vmem [shape: f32[3,1], index: 1, kind: input, shape index: {}]   ;;  %s1738_s2 = inlined_call_operand.vmem [shape: f32[3,1], index: 2, kind: input, shape index: {}]   ;;  %s1739_s3 = inlined_call_operand.vmem [shape: f32[32,3], index: 3, kind: input, shape index: {}]   ;;  %s1740_s4 = inlined_call_operand.vmem [shape: f32[32,1], index: 4, kind: input, shape index: {}]   ;;  %s1741_s5 = inlined_call_operand.vmem [shape: f32[32,32], index: 5, kind: input, shape index: {}]   ;;  %s1742_s6 = inlined_call_operand.vmem [shape: f32[32,1], index: 6, kind: input, shape index: {}]   ;;  %s1743_s7 = inlined_call_operand.vmem [shape: f32[8,32], index: 7, kind: input, shape index: {}]   ;;  %s1744_s8 = inlined_call_operand.vmem [shape: f32[8,32], index: 8, kind: input, shape index: {}]   ;;  %s1745_s9 = inlined_call_operand.vmem [shape: f32[32,128], index: 9, kind: input, shape index: {}]   ;;  %s1746_s10 = inlined_call_operand.vmem [shape: f32[1,128], index: 10, kind: input, shape index: {}]   ;;  %s1747_s11 = inlined_call_operand.hbm [shape: f32[2,8,128], index: 11, kind: output, shape index: {0}]   ;;  %s1748_s12 = inlined_call_operand.hbm [shape: f32[2,8,256], index: 12, kind: output, shape index: {1}]   ;;  %s1749_s13 = inlined_call_operand.hbm [shape: f32[2,8,256], index: 13, kind: output, shape index: {2}]  }
   0x1   :  { %1752 = sst [smem:[#allocation9_spill]] %s1736_s0 }
   0x2   :  { %1753 = sst [smem:[#allocation10_spill]] %s1737_s1 }
   0x3   :  { %1754 = sst [smem:[#allocation11_spill]] %s1738_s2 }
   0x4   :  { %1755 = sst [smem:[#allocation12_spill]] %s1739_s3 }
   0x5   :  { %1756 = sst [smem:[#allocation13_spill]] %s1740_s4 }
   0x6   :  { %1757 = sst [smem:[#allocation14_spill]] %s1741_s5 }
   0x7   :  { %1758 = sst [smem:[#allocation15_spill]] %s1742_s6 }
   0x8   :  { %1759 = sst [smem:[#allocation16_spill]] %s1743_s7 }
   0x9   :  { %1760 = sst [smem:[#allocation17_spill]] %s1744_s8 }
   0xa   :  { %19 = vsyncpa [#allocation3], 0 }
   0xb   :  { %21 = vsyncpa [#allocation3 + $0x1], 0 }
   0xc   :  { %22 = vsyncpa [#allocation5], 0 }
   0xd   :  { %24 = vsyncpa [#allocation5 + $0x1], 0  ;;  %s1460_s25 = smov 0   ;;  %s1462_s26 = smov 0  }
   0xe   :  { %s1464_s27 = smov 0   ;;  %s1466_s28 = smov 0  }
   0xf LB: > { %s1481_s29 = sadd.s32 4294967295, %s1383_s28   ;;  %s1750_s30 = sadd.s32 4294967294, %s1383_s28   ;;  %s1383_s28 = sphi %s1466_s28, %s1779_s28   ;;  %s1379_s27 = sphi %s1464_s27, %s1778_s27   ;;  %s1375_s26 = sphi %s1462_s26, %s1777_s26   ;;  %s1371_s25 = sphi %s1460_s25, %s1776_s25  }
  0x10   : > { %s1485_s14 = sadd.s32 1, %s1383_s28   ;;  %s273_s15 = sadd.s32 1, %s1379_s27 }
  0x11   : > { %s270_s16 = ssub.s32 %s1383_s28, %s1485_s14  ;;  %p283_p0 = scmp.ne.s32.totalorder %s1379_s27, %s1375_s26 }
  0x12   : > { %p271_p1 = scmp.eq.s32.totalorder %s270_s16, 0  ;;  %p284_p2 = scmp.eq.s32.totalorder %s1481_s29, 1 }
  0x13   : > { %p289_p3 = scmp.ne.s32.totalorder %s1375_s26, %s1371_s25  ;;  %p290_p4 = scmp.eq.s32.totalorder %s1750_s30, 1 }
  0x14   : > { %s1498_s17 = scalar_select %p271_p1, %s1379_s27, %s273_s15  }
  0x15   : > { %p1500_p5 = por %p284_p2, %p283_p0  ;;  %p1504_p6 = por %p290_p4, %p289_p3 }
  0x16   : > { %p1154_p7 = scmp.ge.s32.totalorder %s1383_s28, 1  ;;  %p398_p8 = scmp.lt.s32.totalorder %s1383_s28, 3 }
  0x18   : > { %p399_p9 = pnand %p1154_p7, %p398_p8 }
  0x19   : > { %s1763_s3 = sld [smem:[#allocation12_spill]] (!%p399_p9)  ;;  %p452_p10 = scmp.lt.s32.totalorder (!%p399_p9), %s1481_s29, 1 }
  0x1a   : > { %402 = sbr.rel (%p399_p9) target bundleno = 1288 (0x508), region = 64  ;;  %s1764_s1 = sld [smem:[#allocation10_spill]] (!%p399_p9) }
  0x1b   : > { %s1765_s2 = sld [smem:[#allocation11_spill]] (!%p399_p9)  ;;  %s1389_s21 = smov (!%p399_p9), 96  }
  0x1c   : > { %s1766_s4 = sld [smem:[#allocation13_spill]] (!%p399_p9)  ;;  %s1178_s15 = sshll.u32 (!%p399_p9), %s1481_s29, 3 }
  0x1d   : > { %s1767_s6 = sld [smem:[#allocation15_spill]] (!%p399_p9) }
  0x1e   : > { %s1768_s0 = sld [smem:[#allocation9_spill]] (!%p399_p9) }
  0x1f   : > { %v482_v0 = vld [vmem:[%s1763_s3 + $0x10] sm:$0xff]  ;;  %v483_v1 = vld [vmem:[%s1763_s3 + $0x18] sm:$0xff]  ;;  %v1385_v3 = vmov 0   ;;  %v1386_v5 = vmov 1   ;;  %v481_v6 = vld [vmem:[%s1763_s3 + $0x8] sm:$0xff]  ;;  %v1387_v7 = vmov 2  }
  0x20   : > { %v458_v2 = vld [vmem:[%s1764_s1] sm:$0x7]  ;;  %1245 = vset.pattern.permute.xlu2 %v1385_v3  ;;  %1243 = vset.pattern.permute.xlu1 %v1385_v3  ;;  %s453_s30 = scalar_select %p452_p10, %s1481_s29, 1  ;;  %v1388_v19 = vmov 839922192   ;;  %vm663_vm0 = vcmask 261120  }
  0x21   : > { %1242 = vset.pattern.permute.xlu0 %v1385_v3  ;;  %496 = vperm.xlu2 %1245, %v482_v0   ;;  %v469_v4 = vld [vmem:[%s1765_s2] sm:$0x7]  ;;  %v464_v20 = vunpack.c.l.s4 %v1388_v19  ;;  %s1769_s5 = sld [smem:[#allocation14_spill]] }
  0x22   : > { %501 = vperm.xlu1 %1243, %v483_v1   ;;  %461 = vperm.xlu0 %1242, %v458_v2   ;;  %v480_v8 = vld [vmem:[%s1763_s3] sm:$0xff]  ;;  %v598_v9 = vld [vmem:[%s1766_s4 + $0x18] sm:$0xff]  ;;  %v596_v10 = vld [vmem:[%s1766_s4 + $0x8] sm:$0xff]  ;;  %s1185_s24 = sshll.u32 %s453_s30, 3  ;;  %s1770_s7 = sld [smem:[#allocation16_spill]] }
  0x23   : > { %v597_v11 = vld [vmem:[%s1766_s4 + $0x10] sm:$0xff]  ;;  %v639_v12 = vld [vmem:[%s1767_s6] sm:$0xff]  ;;  %v642_v13 = vld [vmem:[%s1767_s6 + $0x18] sm:$0xff]  ;;  %v465_v21 = vunpack.c.0.s8 %v464_v20  ;;  %s1771_s8 = sld [smem:[#allocation17_spill]]  ;;  %s1751_s30 = sshll.u32 %s1481_s29, 4 }
  0x24   : > { %v595_v14 = vld [vmem:[%s1766_s4] sm:$0xff]  ;;  %v640_v15 = vld [vmem:[%s1767_s6 + $0x8] sm:$0xff]  ;;  %v641_v16 = vld [vmem:[%s1767_s6 + $0x10] sm:$0xff]  ;;  %s456_s20 = scalar_lea.vmem %s1768_s0, %s1185_s24  ;;  %s1651_s24 = sand.u32 1, %s1375_s26  }
  0x25   : > { %v457_v26 = vld [vmem:[%s456_s20] sm:$0x77]  ;;  %s1155_s20 = sshll.u32 %s1651_s24, 3  ;;  %s1281_s0 = scalar_lea.hbm %s1747_s11, 16 }
  0x26   : > { %s437_s22 = scalar_lea.vmem [#allocation2], %s1155_s20  ;;  %s994_s20 = scalar_lea.hbm %s1747_s11, %s1178_s15 }
  0x27   : > { %s996_s3 = sshll.u32 %s437_s22, 4  ;;  %s998_s4 = sshll.u32 %s994_s20, 4  ;;  %s997_s3 = int_to_ptr.vmem [resolvable:$true] %s996_s3  ;;  %s999_s4 = int_to_ptr.hbm [resolvable:$true] %s998_s4 }
  0x28   : > { %s1275_s6 = sshra.s32 %s999_s4, 4  ;;  %s1276_s6 = int_to_ptr.hbm [resolvable:$true] %s1275_s6 }
  0x29   : > { %1246 = vset.pattern.permute.xlu2 %v1386_v5  ;;  %p1282_p0 = scmp.lt.s32.totalorder %s1276_s6, %s1747_s11 }
  0x2a   : > { %1244 = vset.pattern.permute.xlu1 %v1386_v5  ;;  %472 = vperm.xlu0 %1242, %v469_v4  }
  0x2b   : > { %528 = vperm.xlu2 %1246, %v482_v0   ;;  %532 = vperm.xlu1 %1244, %v483_v1  }
  0x32   : > { %1247 = vset.pattern.permute.xlu0 %v1387_v7 }
  0x33   : > { %524 = vperm.xlu2 %1246, %v481_v6   ;;  %1248 = vset.pattern.permute.xlu1 %v1385_v3 }
  0x34   : > { %570 = vperm.xlu0 %1247, %v483_v1   ;;  %491 = vperm.xlu1 %1248, %v481_v6  }
  0x3b   : > { %1250 = vset.pattern.permute.xlu2 %v1385_v3 }
  0x3c   : > { %1251 = vset.pattern.permute.xlu0 %v1386_v5  ;;  %486 = vperm.xlu2 %1250, %v480_v8  }
  0x3d   : > { %1249 = vset.pattern.permute.xlu1 %v1387_v7  ;;  %520 = vperm.xlu0 %1251, %v480_v8  }
  0x3e   : > { %566 = vperm.xlu1 %1249, %v482_v0  }
  0x44   : > { %616 = vperm.xlu2 %1250, %v598_v9  }
  0x45   : > { %1252 = vset.pattern.permute.xlu0 %v1385_v3 }
  0x46   : > { %562 = vperm.xlu1 %1249, %v481_v6   ;;  %606 = vperm.xlu0 %1252, %v596_v10  }
  0x4c   : > { %611 = vperm.xlu2 %1250, %v597_v11  }
  0x4e   : > { %558 = vperm.xlu1 %1249, %v480_v8   ;;  %645 = vperm.xlu0 %1252, %v639_v12  }
  0x54   : > { %660 = vperm.xlu2 %1250, %v642_v13  }
  0x56   : > { %1253 = vset.pattern.permute.xlu1 %v1385_v3 }
  0x57   : > { %601 = vperm.xlu1 %1253, %v595_v14  }
  0x5c   : > { %650 = vperm.xlu2 %1250, %v640_v15  }
  0x5f   : > { %655 = vperm.xlu1 %1253, %v641_v16  }
  0x7b   : > { %v497_v17 = vpop.permute.xlu2 %496 }
  0x85   : > { %v529_v18 = vpop.permute.xlu2 %528 }
  0x8d   : > { %v525_v24 = vpop.permute.xlu2 %524 }
  0x94   : > { %v502_v22 = vpop.permute.xlu1 %501  ;;  %v462_v23 = vpop.permute.xlu0 %461 }
  0x95   : > { %v466_v25 = vperm.slane %v462_v23, %v465_v21 }
  0x96   : > { %v1557_v32 = vpop.permute.xlu2 %486 }
  0x97   : > { %v468_v27 = vsub.f32 %v457_v26, %v466_v25 }
  0x9c   : > { %v473_v28 = vpop.permute.xlu0 %472 }
  0x9d   : > { %v477_v29 = vperm.slane %v473_v28, %v465_v21  ;;  %v533_v30 = vpop.permute.xlu1 %532 }
  0x9e   : > { %v617_v55 = vpop.permute.xlu2 %616 }
  0x9f   : > { %v479_v31 = vmul.f32 %v477_v29, %v468_v27 }
  0xa1   : > { %v505_v33 = vperm.slane %v479_v31, 0  ;;  %v506_v34 = vperm.slane %v479_v31, 4  ;;  %v535_v35 = vperm.slane %v479_v31, 1  ;;  %v536_v36 = vperm.slane %v479_v31, 5 }
  0xa2   : > { %v573_v37 = vperm.slane %v479_v31, 2  ;;  %v574_v38 = vperm.slane %v479_v31, 6 }
  0xa3   : > { %v1559_v39 = vperm.slane %v505_v33, 0  ;;  %v1561_v40 = vperm.slane %v506_v34, 0  ;;  %v539_v41 = vperm.slane %v535_v35, 1  ;;  %v540_v42 = vperm.slane %v536_v36, 1 }
  0xa4   : > { %v1563_v43 = vperm.slane %v573_v37, 2  ;;  %v1565_v44 = vperm.slane %v574_v38, 2 }
  0xa5   : > { %v517_v45 = vmul.f32 %v1559_v39, %v502_v22  ;;  %v518_v46 = vmul.f32 %v1561_v40, %v502_v22  ;;  %v547_v47 = vmul.f32 %v539_v41, %v533_v30  ;;  %v548_v48 = vmul.f32 %v540_v42, %v533_v30 }
  0xa6   : > { %v492_v49 = vpop.permute.xlu1 %491  ;;  %v571_v52 = vpop.permute.xlu0 %570  ;;  %v515_v60 = vmul.f32 %v1559_v39, %v497_v17  ;;  %v516_v61 = vmul.f32 %v1561_v40, %v497_v17  ;;  %v545_v62 = vmul.f32 %v539_v41, %v529_v18  ;;  %v546_v63 = vmul.f32 %v540_v42, %v529_v18 }
  0xa7   : > { %v555_v50 = vadd.f32 %v547_v47, %v517_v45  ;;  %v556_v51 = vadd.f32 %v548_v48, %v518_v46  ;;  %v585_v53 = vmul.f32 %v1563_v43, %v571_v52  ;;  %v586_v54 = vmul.f32 %v1565_v44, %v571_v52  ;;  %v612_v10 = vpop.permute.xlu2 %611 }
  0xa8   : > { %v553_v3 = vadd.f32 %v545_v62, %v515_v60  ;;  %v554_v4 = vadd.f32 %v546_v63, %v516_v61  ;;  %v513_v11 = vmul.f32 %v1559_v39, %v492_v49  ;;  %v514_v12 = vmul.f32 %v1561_v40, %v492_v49 }
  0xa9   : > { %v593_v56 = vadd.f32 %v585_v53, %v555_v50  ;;  %v594_v57 = vadd.f32 %v586_v54, %v556_v51  ;;  %v543_v15 = vmul.f32 %v539_v41, %v525_v24  ;;  %v544_v16 = vmul.f32 %v540_v42, %v525_v24 }
  0xaa   : > { %v511_v35 = vmul.f32 %v1559_v39, %v1557_v32  ;;  %v512_v36 = vmul.f32 %v1561_v40, %v1557_v32  ;;  %v635_v39 = vld [vmem:[%s1769_s5] sm:$0xff]  ;;  %v636_v32 = vld [vmem:[%s1769_s5 + $0x8] sm:$0xff]  ;;  %v637_v40 = vld [vmem:[%s1769_s5 + $0x10] sm:$0xff] }
  0xab   : > { %v625_v58 = vadd.f32 %v617_v55, %v593_v56  ;;  %v626_v59 = vadd.f32 %v617_v55, %v594_v57  ;;  %v551_v19 = vadd.f32 %v543_v15, %v513_v11  ;;  %v552_v21 = vadd.f32 %v544_v16, %v514_v12 }
  0xad   : > { %v633_v0 = vmax.f32 %v625_v58, 0.0  ;;  %v634_v1 = vmax.f32 %v626_v59, 0.0 }
  0xaf   : > { %688 = vmatpush.msra.mxu0 %v633_v0  ;;  %717 = vmatpush.msra.mxu1 %v634_v1  ;;  %v521_v7 = vpop.permute.xlu0 %520  ;;  %v661_v57 = vpop.permute.xlu2 %660 }
  0xb0   : > { %v567_v2 = vpop.permute.xlu1 %566  ;;  %v541_v24 = vmul.f32 %v539_v41, %v521_v7  ;;  %v542_v34 = vmul.f32 %v540_v42, %v521_v7  ;;  %v638_v42 = vld [vmem:[%s1769_s5 + $0x18] sm:$0xff]  ;;  %v734_v7 = vld [vmem:[%s1770_s7] sm:$0xff]  ;;  %s974_s5 = scalar_lea.sflag [#allocation3], %s1651_s24  ;;  %s1277_s7 = scalar_lea.hbm %s1276_s6, 8 }
  0xb1   : > { %v583_v5 = vmul.f32 %v1563_v43, %v567_v2  ;;  %v584_v6 = vmul.f32 %v1565_v44, %v567_v2  ;;  %p1278_p11 = scmp.ne.s32.totalorder %s1276_s6, %s1277_s7  ;;  %p1283_p1 = scmp.lt.s32.totalorder %s1281_s0, %s1277_s7 }
  0xb2   : > { %v549_v45 = vadd.f32 %v541_v24, %v511_v35  ;;  %v550_v46 = vadd.f32 %v542_v34, %v512_v36 }
  0xb3   : > { %v591_v8 = vadd.f32 %v583_v5, %v553_v3  ;;  %v592_v9 = vadd.f32 %v584_v6, %v554_v4  ;;  %p1279_p12 = pnand %p1278_p11, %p1500_p5  ;;  %p1284_p2 = por %p1283_p1, %p1282_p0 }
  0xb5   : > { %v623_v13 = vadd.f32 %v612_v10, %v591_v8  ;;  %v624_v14 = vadd.f32 %v612_v10, %v592_v9  ;;  %p1280_p13 = pneg %p1279_p12 }
  0xb7   : > { %v631_v17 = vmax.f32 %v623_v13, 0.0  ;;  %v632_v18 = vmax.f32 %v624_v14, 0.0  ;;  %v651_v1 = vpop.permute.xlu2 %650  ;;  %p1285_p3 = pnand %p1284_p2, %p1280_p13 }
  0xb8   : > { %v563_v20 = vpop.permute.xlu1 %562  ;;  %v607_v25 = vpop.permute.xlu0 %606 }
  0xb9   : > { %v581_v22 = vmul.f32 %v1563_v43, %v563_v20  ;;  %v582_v23 = vmul.f32 %v1565_v44, %v563_v20  ;;  %689 = vmatpush.msra.mxu0 %v631_v17  ;;  %718 = vmatpush.msra.mxu1 %v632_v18 }
  0xbb   : > { %v589_v26 = vadd.f32 %v581_v22, %v551_v19  ;;  %v590_v27 = vadd.f32 %v582_v23, %v552_v21  ;;  %v853_v21 = vld [vmem:[%s1745_s9 + $0x18] sm:$0xff]  ;;  %v852_v22 = vld [vmem:[%s1745_s9 + $0x10] sm:$0xff]  ;;  %v851_v23 = vld [vmem:[%s1745_s9 + $0x8] sm:$0xff] }
  0xbd   : > { %v621_v28 = vadd.f32 %v607_v25, %v589_v26  ;;  %v622_v29 = vadd.f32 %v607_v25, %v590_v27  ;;  %v850_v25 = vld [vmem:[%s1745_s9] sm:$0xff] }
  0xbf   : > { %v629_v30 = vmax.f32 %v621_v28, 0.0  ;;  %v630_v31 = vmax.f32 %v622_v29, 0.0 }
  0xc0   : > { %v559_v33 = vpop.permute.xlu1 %558  ;;  %v646_v4 = vpop.permute.xlu0 %645 }
  0xc1   : > { %690 = vmatpush.msra.mxu0 %v629_v30  ;;  %719 = vmatpush.msra.mxu1 %v630_v31  ;;  %v579_v37 = vmul.f32 %v1563_v43, %v559_v33  ;;  %v580_v38 = vmul.f32 %v1565_v44, %v559_v33 }
  0xc3   : > { %v587_v47 = vadd.f32 %v579_v37, %v549_v45  ;;  %v588_v48 = vadd.f32 %v580_v38, %v550_v46 }
  0xc9   : > { %v602_v49 = vpop.permute.xlu1 %601 }
  0xca   : > { %v619_v50 = vadd.f32 %v602_v49, %v587_v47  ;;  %v620_v51 = vadd.f32 %v602_v49, %v588_v48  ;;  %v848_v47 = vld [vmem:[%s1771_s8] sm:$0xff] }
  0xcc   : > { %v627_v52 = vmax.f32 %v619_v50, 0.0  ;;  %v628_v41 = vmax.f32 %v620_v51, 0.0  ;;  %v1254_v50 = vld [vmem:[%s1746_s10] ss:$0 sm:$0xff] }
  0xce   : > { %691 = vmatpush.msra.mxu0 %v627_v52  ;;  %720 = vmatpush.msra.mxu1 %v628_v41 }
  0xcf   : > { %1160 = vmatmul.msk.f32.vlgmr.msra.gmra.mxu0 %vm663_vm0, %v635_v39  ;;  %1164 = vmatmul.msk.f32.vlgmr.msra.gmra.mxu1 %vm663_vm0, %v635_v39 }
  0xd1   : > { %v656_v62 = vpop.permute.xlu1 %655 }
  0xd7   : > { %1161 = vmatmul.msk.f32.gmra.mxu0 %vm663_vm0, %v636_v32  ;;  %1165 = vmatmul.msk.f32.gmra.mxu1 %vm663_vm0, %v636_v32 }
  0xdf   : > { %1162 = vmatmul.msk.f32.gmra.mxu0 %vm663_vm0, %v637_v40  ;;  %1166 = vmatmul.msk.f32.gmra.mxu1 %vm663_vm0, %v637_v40 }
  0xe7   : > { %1163 = vmatmul.msk.f32.gmra.mxu0 %vm663_vm0, %v638_v42  ;;  %1167 = vmatmul.msk.f32.gmra.mxu1 %vm663_vm0, %v638_v42 }
 0x14c   : > { %v693_v43 = vpop.f32.mrf.mxu0  ;;  %v722_v44 = vpop.f32.mrf.mxu1 }
 0x14d   : > { %v694_v5 = vadd.f32 %v693_v43, %v646_v4  ;;  %v1615_v6 = vadd.f32 %v722_v44, %v646_v4 }
 0x154   : > { %v696_v53 = vpop.f32.mrf.mxu0  ;;  %v725_v54 = vpop.f32.mrf.mxu1 }
 0x155   : > { %v697_v2 = vadd.f32 %v696_v53, %v651_v1  ;;  %v1611_v3 = vadd.f32 %v725_v54, %v651_v1 }
 0x15c   : > { %v699_v55 = vpop.f32.mrf.mxu0  ;;  %v728_v56 = vpop.f32.mrf.mxu1 }
 0x15d   : > { %v700_v63 = vadd.f32 %v699_v55, %v656_v62  ;;  %v1607_v0 = vadd.f32 %v728_v56, %v656_v62 }
 0x164   : > { %v702_v58 = vpop.f32.mrf.mxu0  ;;  %v731_v59 = vpop.f32.mrf.mxu1 }
 0x165   : > { %v703_v60 = vadd.f32 %v702_v58, %v661_v57  ;;  %v1605_v61 = vadd.f32 %v731_v59, %v661_v57 }
 0x167   : > { %750 = vmatpush.msra.mxu2 %v703_v60  ;;  %770 = vmatpush.msra.mxu3 %v1605_v61 }
 0x168   : > { %917 = vmatpush.msrb.mxu0 %v1605_v61  ;;  %943 = vmatpush.msrb.mxu1 %v703_v60 }
 0x169   : > { %751 = vmatpush.msra.mxu2 %v700_v63  ;;  %771 = vmatpush.msra.mxu3 %v1607_v0 }
 0x16a   : > { %918 = vmatpush.msrb.mxu0 %v1607_v0  ;;  %944 = vmatpush.msrb.mxu1 %v700_v63 }
 0x16b   : > { %752 = vmatpush.msra.mxu2 %v697_v2  ;;  %772 = vmatpush.msra.mxu3 %v1611_v3 }
 0x16c   : > { %919 = vmatpush.msrb.mxu0 %v1611_v3  ;;  %945 = vmatpush.msrb.mxu1 %v697_v2 }
 0x16d   : > { %753 = vmatpush.msra.mxu2 %v694_v5  ;;  %773 = vmatpush.msra.mxu3 %v1615_v6 }
 0x16e   : > { %920 = vmatpush.msrb.mxu0 %v1615_v6  ;;  %946 = vmatpush.msrb.mxu1 %v694_v5 }
 0x16f   : > { %1168 = vmatmul.msk.f32.vlgmr.msra.gmra.mxu2 %vm663_vm0, %v734_v7  ;;  %1169 = vmatmul.msk.f32.vlgmr.msra.gmra.mxu3 %vm663_vm0, %v734_v7 }
 0x170   : > { %820 = vmatpush.xpose.msrb.mxu2 %v703_v60  ;;  %840 = vmatpush.xpose.msrb.mxu3 %v1605_v61 }
 0x174   : > { %821 = vmatpush.xpose.msrb.mxu2 %v700_v63  ;;  %841 = vmatpush.xpose.msrb.mxu3 %v1607_v0 }
 0x178   : > { %822 = vmatpush.xpose.msrb.mxu2 %v697_v2  ;;  %842 = vmatpush.xpose.msrb.mxu3 %v1611_v3 }
 0x17c   : > { %823 = vmatpush.xpose.msrb.mxu2 %v694_v5  ;;  %843 = vmatpush.xpose.msrb.mxu3 %v1615_v6 }
 0x180   : > { %897 = vmatpush.msra.mxu3 %v703_v60  ;;  %873 = vmatpush.msra.mxu2 %v853_v21 }
 0x182   : > { %898 = vmatpush.msra.mxu3 %v700_v63  ;;  %874 = vmatpush.msra.mxu2 %v852_v22 }
 0x184   : > { %899 = vmatpush.msra.mxu3 %v697_v2  ;;  %875 = vmatpush.msra.mxu2 %v851_v23 }
 0x186   : > { %900 = vmatpush.msra.mxu3 %v694_v5  ;;  %876 = vmatpush.msra.mxu2 %v850_v25 }
 0x1f2   : > { %v755_v8 = vpop.f32.mrf.mxu2  ;;  %v775_v9 = vpop.f32.mrf.mxu3 }
 0x1f3   : > { %v778_v10 = vmul.f32 0.17677669, %v755_v8  ;;  %v779_v11 = vmul.f32 0.17677669, %v775_v9 }
 0x1f5   : > { %v780_v12 = vmax.f32 %v778_v10, %v779_v11 }
 0x1f7   : > { %781 = vmax.xlane.f32.xlu1 %v780_v12 }
 0x26a   : > { %v782_v13 = vpop.xlane.xlu1 %781 }
 0x26b   : > { %v783_v14 = vsub.f32 %v778_v10, %v782_v13  ;;  %v784_v15 = vsub.f32 %v779_v11, %v782_v13 }
 0x26d   : > { %v785_v16 = vmul.f32 1.442695, %v783_v14  ;;  %v787_v17 = vmul.f32 1.442695, %v784_v15 }
 0x26f   : > { %1255 = vpow2.f32 %v785_v16 }
 0x270   : > { %1257 = vpow2.f32 %v787_v17 }
 0x275   : > { %v1256_v18 = vpop.eup %1255 }
 0x276   : > { %v1258_v19 = vpop.eup %1257 }
 0x277   : > { %v789_v20 = vadd.f32 %v1258_v19, %v1256_v18 }
 0x279   : > { %790 = vadd.xlane.f32.xlu2 %v789_v20 }
 0x2ec   : > { %v791_v26 = vpop.xlane.xlu2 %790 }
 0x2ed   : > { %1259 = vrcp.f32 %v791_v26  ;;  %v803_v30 = vand.u32 2147483648, %v791_v26  ;;  %v801_v33 = vand.u32 2147483647, %v791_v26  ;;  %vm797_vm2 = vweird.f32 %v791_v26 }
 0x2ef   : > { %v804_v34 = vor.u32 1.1754944e-38, %v803_v30  ;;  %vm802_vm4 = vcmp.eq.f32.partialorder %v801_v33, 8.507059e+37 }
 0x2f3   : > { %v1260_v27 = vpop.eup %1259 }
 0x2f4   : > { %v793_v28 = vmul.f32 %v1260_v27, %v791_v26  ;;  %vm798_vm1 = vweird.f32 %v1260_v27 }
 0x2f5   : > { %vm799_vm3 = vmor %vm797_vm2, %vm798_vm1 }
 0x2f6   : > { %v794_v29 = vsub.f32 1.0, %v793_v28 }
 0x2f8   : > { %v795_v31 = vmul.f32 %v1260_v27, %v794_v29 }
 0x2fa   : > { %v796_v24 = vadd.f32 %v1260_v27, %v795_v31 }
 0x2fc   : > { %v800_v35 = vsel %vm799_vm3, %v1260_v27, %v796_v24 }
 0x2fd   : > { %v805_v36 = vsel %vm802_vm4, %v804_v34, %v800_v35 }
 0x2fe   : > { %v806_v37 = vmul.f32 %v1256_v18, %v805_v36  ;;  %v807_v38 = vmul.f32 %v1258_v19, %v805_v36 }
 0x300   : > { %824 = vmatmul.f32.vlgmr.msrb.gmra.mxu2 %v806_v37  ;;  %844 = vmatmul.f32.vlgmr.msrb.gmra.mxu3 %v807_v38 }
 0x301   : > { %963 = vmatpush.msrb.mxu2 %v1605_v61 }
 0x303   : > { %964 = vmatpush.msrb.mxu2 %v1607_v0 }
 0x305   : > { %965 = vmatpush.msrb.mxu2 %v1611_v3 }
 0x307   : > { %966 = vmatpush.msrb.mxu2 %v1615_v6 }
 0x383   : > { %v825_v45 = vpop.f32.mrf.mxu2  ;;  %v845_v46 = vpop.f32.mrf.mxu3 }
 0x384   : > { %v846_v48 = vadd.f32 %v845_v46, %v825_v45 }
 0x386   : > { %v849_v49 = vadd.f32 %v848_v47, %v846_v48 }
 0x388   : > { %1170 = vmatmul.msk.f32.vlgmr.msra.gmra.mxu2 %vm663_vm0, %v849_v49 }
 0x40b   : > { %v878_v51 = vpop.f32.mrf.mxu2 }
 0x40c   : > { %v879_v52 = vadd.f32 %v1254_v50, %v878_v51 }
 0x40e   : > { %927 = vrot.lane.b32.xlu0 %v879_v52, %s1389_s21  ;;  %1171 = vmatmul.msk.f32.vlgmr.msra.gmra.mxu3 %vm663_vm0, %v879_v52  ;;  %881 = vst [vmem:[%s437_s22] sm:$0xff] %v879_v52  ;;  %s1009_s21 = scalar_lea.hbm %s1748_s12, %s1751_s30 }
 0x40f   : > { %1172 = vmatmul.msk.f32.vlgmr.msrb.gmra.mxu0 %vm663_vm0, %v879_v52 }
 0x480   : > { %v928_v41 = vpop.permute.xlu0 %927 }
 0x481   : > { %1173 = vmatmul.msk.f32.vlgmr.msrb.gmra.mxu1 %vm663_vm0, %v928_v41  ;;  %1174 = vmatmul.msk.f32.vlgmr.msrb.gmra.mxu2 %vm663_vm0, %v928_v41 }
 0x482   : > { %1288 = shalt.err (!%p1285_p3)
}
 0x483   : > { %1188 = dma.vmem_to_hbm [thread:$0]  (%p1500_p5), %s997_s3, 128, %s999_s4, %s974_s5  }
 0x484   : > { %s1772_s1 = sshll.u32 %s1651_s24, 4  ;;  %s978_s8 = sand.u32 1, %s1481_s29  }
 0x485   : > { %s444_s2 = scalar_lea.vmem [#allocation4], %s1772_s1  ;;  %s1013_s23 = sshll.u32 %s1009_s21, 4  ;;  %s1014_s23 = int_to_ptr.hbm [resolvable:$true] %s1013_s23 }
 0x486   : > { %s1011_s22 = sshll.u32 %s444_s2, 4  ;;  %s1686_s6 = scalar_lea.sflag [#allocation5], %s978_s8  ;;  %s1012_s22 = int_to_ptr.vmem [resolvable:$true] %s1011_s22 }
 0x487   : > { %s1303_s7 = sshra.s32 %s1014_s23, 4  ;;  %s1309_s5 = scalar_lea.hbm %s1748_s12, 32  ;;  %s1304_s7 = int_to_ptr.hbm [resolvable:$true] %s1303_s7 }
 0x488   : > { %s1305_s30 = scalar_lea.hbm %s1304_s7, 16  ;;  %p1310_p9 = scmp.lt.s32.totalorder %s1304_s7, %s1748_s12 }
 0x489   : > { %p1306_p4 = scmp.ne.s32.totalorder %s1304_s7, %s1305_s30  ;;  %p1311_p10 = scmp.lt.s32.totalorder %s1309_s5, %s1305_s30 }
 0x48b   : > { %p1307_p7 = pnand %p1306_p4, %p1500_p5  ;;  %p1312_p11 = por %p1311_p10, %p1310_p9 }
 0x48c   : > { %v922_v39 = vpop.f32.mrf.mxu0 }
 0x48d   : > { %926 = vst [vmem:[%s444_s2 + $0x8] sm:$0xff] %v922_v39  ;;  %p1308_p8 = pneg %p1307_p7 }
 0x48f   : > { %p1313_p12 = pnand %p1312_p11, %p1308_p8 }
 0x491   : > { %v902_v32 = vpop.f32.mrf.mxu3 }
 0x492   : > { %925 = vst [vmem:[%s444_s2] sm:$0xff] %v902_v32 }
 0x493   : > { %1316 = shalt.err (!%p1313_p12)
}
 0x494   : > { %1189 = dma.vmem_to_hbm [thread:$0]  (%p1500_p5), %s1012_s22, 256, %s1014_s23, %s1686_s6  }
 0x495   : > { %s1773_s21 = sshll.u32 %s1481_s29, 4  ;;  %s1774_s2 = sshll.u32 %s1651_s24, 4 }
 0x496   : > { %s1024_s1 = scalar_lea.hbm %s1749_s13, %s1773_s21  ;;  %s451_s8 = scalar_lea.vmem [#allocation6], %s1774_s2 }
 0x497   : > { %s1026_s7 = sshll.u32 %s451_s8, 4  ;;  %s1028_s30 = sshll.u32 %s1024_s1, 4  ;;  %s1027_s7 = int_to_ptr.vmem [resolvable:$true] %s1026_s7  ;;  %s1029_s30 = int_to_ptr.hbm [resolvable:$true] %s1028_s30 }
 0x498   : > { %s1331_s3 = sshra.s32 %s1029_s30, 4  ;;  %s1337_s23 = scalar_lea.hbm %s1749_s13, 32  ;;  %s1332_s3 = int_to_ptr.hbm [resolvable:$true] %s1331_s3 }
 0x499   : > { %s1333_s4 = scalar_lea.hbm %s1332_s3, 16  ;;  %p1338_p2 = scmp.lt.s32.totalorder %s1332_s3, %s1749_s13 }
 0x49a   : > { %p1334_p13 = scmp.ne.s32.totalorder %s1332_s3, %s1333_s4  ;;  %p1339_p3 = scmp.lt.s32.totalorder %s1337_s23, %s1333_s4 }
 0x49c   : > { %p1335_p0 = pnand %p1334_p13, %p1500_p5  ;;  %p1340_p4 = por %p1339_p3, %p1338_p2 }
 0x49e   : > { %p1336_p1 = pneg %p1335_p0 }
 0x4a0   : > { %p1341_p7 = pnand %p1340_p4, %p1336_p1 }
 0x4fe   : > { %v948_v40 = vpop.f32.mrf.mxu1 }
 0x4ff   : > { %971 = vst [vmem:[%s451_s8] sm:$0xff] %v948_v40 }
 0x504   : > { %v968_v42 = vpop.f32.mrf.mxu2 }
 0x505   : > { %972 = vst [vmem:[%s451_s8 + $0x8] sm:$0xff] %v968_v42 }
 0x506   : > { %1344 = shalt.err (!%p1341_p7)
}
 0x507   : > { %1190 = dma.vmem_to_hbm [thread:$0]  (%p1500_p5), %s1027_s7, 256, %s1029_s30, %s1686_s6  }
 0x508 PF: > { %p1204_p8 = scmp.ge.s32.totalorder %s1383_s28, 2  ;;  %s1040_s15 = sand.u32 1, %s1371_s25  }
 0x509   : > { %s1041_s20 = scalar_lea.sflag [#allocation3], %s1040_s15 }
 0x50a   : > { %p1195_p9 = pnand %p1204_p8, %p1504_p6 }
 0x50c   : > { %p1196_p10 = pneg %p1195_p9 }
 0x50e   : > { %1362 = dma.done.wait (%p1196_p10), %s1041_s20, 128  }
 0x50f   : > { %1364 = vsyncadd (%p1196_p10), %s1041_s20, 4294967168  ;;  %s1775_s21 = sadd.s32 4294967294, %s1383_s28  }
 0x510   : > { %s1050_s0 = sand.u32 1, %s1775_s21  }
 0x511   : > { %s1051_s16 = scalar_lea.sflag [#allocation5], %s1050_s0 }
 0x512   : > { %1366 = dma.done.wait (%p1196_p10), %s1051_s16, 512  }
 0x513   : > { %1368 = vsyncadd (%p1196_p10), %s1051_s16, 4294966784  ;;  %p27_p5 = scmp.ge.s32.totalorder %s1485_s14, 4   ;;  %s1776_s25 = smov %s1375_s26 }
 0x514   : > { %s1777_s26 = smov %s1379_s27  ;;  %s1778_s27 = smov %s1498_s17 }
 0x515   : > { %s1779_s28 = smov %s1485_s14  ;;  %29 = sbr.rel (!%p27_p5) target bundleno = 15 (0xf), region = 131 }
 0x51a   :  { %1067 = vsyncpa [#allocation3], 1 }
 0x51b   :  { %1069 = vsyncpa [#allocation3 + $0x1], 1 }
 0x51c   :  { %1070 = vsyncpa [#allocation5], 1 }
 0x51d   :  { %1072 = vsyncpa [#allocation5 + $0x1], 1 }

</bundles_post_ra>
